<compile_context>
chip_gen: v5e
topology: v5e:2x2
jax: 0.10.0
libtpu: 0.0.40
codegen_flags: <defaults>
</compile_context>

<pallas_src>
import jax
import jax.numpy as jnp
from jax.experimental import pallas as pl
from jax.experimental.pallas import tpu as pltpu


IN_FEATURES = 180
H1 = 256
H2 = 32
N_CLFS = 8          # len(models) is 0 in the source script; use a small non-degenerate value.
H2_PAD = 128        # lane-dense padded hidden dim for fc2 output / fc3 input
OUT_PAD = 128       # lane-dense padded output dim
TM_MAX = 256        # max batch-tile rows per grid step (big tiles amortize step overhead)


def _qnetwork_kernel(x_ref, w1_ref, b1_ref, w2_ref, b2_ref, w3_ref, b3_ref, o_ref):
    # fc1: (TM,180)x(180,256) on the MXU, bf16 inputs, f32 accumulation.
    x = x_ref[...].astype(jnp.bfloat16)
    h1 = jnp.dot(x, w1_ref[...], preferred_element_type=jnp.float32) + b1_ref[...]
    h1 = jnp.maximum(h1, 0.0)                       # relu(fc1), f32

    # fc2: (TM,256)x(256,128)  (columns 32..127 are zero padding)
    h2 = jnp.dot(h1.astype(jnp.bfloat16), w2_ref[...],
                 preferred_element_type=jnp.float32) + b2_ref[...]
    h2 = jnp.maximum(h2, 0.0)                       # relu(fc2); padded lanes stay 0

    # fc3: (TM,128)x(128,128)  (rows >=32 and columns >=N_CLFS are zero padding)
    h3 = jnp.dot(h2.astype(jnp.bfloat16), w3_ref[...],
                 preferred_element_type=jnp.float32) + b3_ref[...]
    h3 = jnp.maximum(h3, 0.0)                       # relu(fc3)

    # sigmoid: exp on the EUP, approx reciprocal on the EUP -> off the VALU slots.
    o_ref[...] = pl.reciprocal(1.0 + jnp.exp(-h3), approx=True)


def _round_up(n, m):
    return pl.cdiv(n, m) * m


def qnetwork_forward(x, packed_params):
    """x: (B, 180) or anything reshaping to (-1, 180). Returns (B, N_CLFS) f32."""
    w1, b1, w2, b2, w3, b3 = packed_params
    x2 = x.reshape(-1, IN_FEATURES).astype(jnp.float32)
    B = x2.shape[0]

    # Adaptive batch tile: small batches stay in one grid step (only pad to a
    # sublane multiple of 8); large batches use TM_MAX-row tiles.
    tm = min(TM_MAX, _round_up(B, 8))
    Bp = _round_up(B, tm)
    if Bp != B:
        x2 = jnp.pad(x2, ((0, Bp - B), (0, 0)))

    out = pl.pallas_call(
        _qnetwork_kernel,
        out_shape=jax.ShapeDtypeStruct((Bp, OUT_PAD), jnp.float32),
        grid=(Bp // tm,),
        in_specs=[
            pl.BlockSpec((tm, IN_FEATURES), lambda i: (i, 0)),     # x tile
            pl.BlockSpec((IN_FEATURES, H1), lambda i: (0, 0)),     # w1 (resident)
            pl.BlockSpec((1, H1), lambda i: (0, 0)),               # b1 (resident)
            pl.BlockSpec((H1, H2_PAD), lambda i: (0, 0)),          # w2 (resident)
            pl.BlockSpec((1, H2_PAD), lambda i: (0, 0)),           # b2 (resident)
            pl.BlockSpec((H2_PAD, OUT_PAD), lambda i: (0, 0)),     # w3 (resident)
            pl.BlockSpec((1, OUT_PAD), lambda i: (0, 0)),          # b3 (resident)
        ],
        out_specs=pl.BlockSpec((tm, OUT_PAD), lambda i: (i, 0)),
        compiler_params=pltpu.CompilerParams(
            dimension_semantics=("parallel",)),
    )(x2, w1, b1, w2, b2, w3, b3)
    return out[:B, :N_CLFS]


def init_params(key):
    """Deterministic init mirroring PyTorch Linear defaults:
    U(-1/sqrt(fan_in), 1/sqrt(fan_in)) for both weight and bias.
    Weights stored as (in_features, out_features), all f32 (un-padded)."""
    def linear(k, fan_in, fan_out):
        kw, kb = jax.random.split(k)
        bound = 1.0 / jnp.sqrt(fan_in)
        w = jax.random.uniform(kw, (fan_in, fan_out), jnp.float32, -bound, bound)
        b = jax.random.uniform(kb, (1, fan_out), jnp.float32, -bound, bound)
        return w, b

    k1, k2, k3 = jax.random.split(key, 3)
    w1, b1 = linear(k1, IN_FEATURES, H1)
    w2, b2 = linear(k2, H1, H2)
    w3, b3 = linear(k3, H2, N_CLFS)
    return (w1, b1, w2, b2, w3, b3)


def pack_params(params):
    """Zero-pad fc2/fc3 to lane-dense 128 columns/rows; weights -> bf16, biases f32."""
    w1, b1, w2, b2, w3, b3 = params
    w2p = jnp.zeros((H1, H2_PAD), jnp.float32).at[:, :H2].set(w2)
    b2p = jnp.zeros((1, H2_PAD), jnp.float32).at[:, :H2].set(b2)
    w3p = jnp.zeros((H2_PAD, OUT_PAD), jnp.float32).at[:H2, :N_CLFS].set(w3)
    b3p = jnp.zeros((1, OUT_PAD), jnp.float32).at[:, :N_CLFS].set(b3)
    return (w1.astype(jnp.bfloat16), b1,
            w2p.astype(jnp.bfloat16), b2p,
            w3p.astype(jnp.bfloat16), b3p)


def _reference_forward(x, params):
    """Pure-f32 JAX reference of the PyTorch module (per-row)."""
    w1, b1, w2, b2, w3, b3 = params
    h = x.reshape(-1, IN_FEATURES).astype(jnp.float32)
    h = jnp.maximum(h @ w1 + b1, 0.0)
    h = jnp.maximum(h @ w2 + b2, 0.0)
    h = jnp.maximum(h @ w3 + b3, 0.0)
    return jax.nn.sigmoid(h)


if __name__ == "__main__":
    key = jax.random.PRNGKey(0)
    k_params, k_x1, k_x2 = jax.random.split(key, 3)

    params = init_params(k_params)
    packed = pack_params(params)

    # Small batch (single grid step, only sublane padding) — typical DQN acting.
    B_small = 4
    x_small = jax.random.normal(k_x1, (B_small, IN_FEATURES), jnp.float32)
    y_small = qnetwork_forward(x_small, packed)
    jax.block_until_ready(y_small)
    y_small_ref = _reference_forward(x_small, params)
    assert y_small.shape == (B_small, N_CLFS)
    assert jnp.allclose(y_small, y_small_ref, atol=2e-2, rtol=2e-2), \
        float(jnp.max(jnp.abs(y_small - y_small_ref)))

    # Larger batch that exercises the grid (2 tiles of 256) and row padding.
    B_big = 300
    x_big = jax.random.normal(k_x2, (B_big, IN_FEATURES), jnp.float32)
    y_big = qnetwork_forward(x_big, packed)
    jax.block_until_ready(y_big)
    y_big_ref = _reference_forward(x_big, params)
    assert y_big.shape == (B_big, N_CLFS)
    assert jnp.allclose(y_big, y_big_ref, atol=2e-2, rtol=2e-2), \
        float(jnp.max(jnp.abs(y_big - y_big_ref)))

    print("KERNEL_OK")
</pallas_src>

<mosaic_0001>
module attributes {stable_mosaic.version = 11 : i64} {
  func.func @_qnetwork_kernel(%arg0: i32, %arg1: memref<8x180xf32, #tpu.memory_space<vmem>>, %arg2: memref<180x256xbf16, #tpu.memory_space<vmem>>, %arg3: memref<1x256xf32, #tpu.memory_space<vmem>>, %arg4: memref<256x128xbf16, #tpu.memory_space<vmem>>, %arg5: memref<1x128xf32, #tpu.memory_space<vmem>>, %arg6: memref<128x128xbf16, #tpu.memory_space<vmem>>, %arg7: memref<1x128xf32, #tpu.memory_space<vmem>>, %arg8: memref<8x128xf32, #tpu.memory_space<vmem>>) attributes {dimension_semantics = [#tpu.dimension_semantics<parallel>], iteration_bounds = array<i64: 1>, scalar_prefetch = 0 : i64, scratch_operands = 0 : i64, tpu.core_type = #tpu.core_type<tc>, window_params = [{transform_indices = @transform_0, window_bounds = array<i64: 8, 180>}, {pipeline_mode = #tpu.pipeline_mode<synchronous>, transform_indices = @transform_1, window_bounds = array<i64: 180, 256>}, {pipeline_mode = #tpu.pipeline_mode<synchronous>, transform_indices = @transform_2, window_bounds = array<i64: 1, 256>}, {pipeline_mode = #tpu.pipeline_mode<synchronous>, transform_indices = @transform_3, window_bounds = array<i64: 256, 128>}, {pipeline_mode = #tpu.pipeline_mode<synchronous>, transform_indices = @transform_4, window_bounds = array<i64: 1, 128>}, {pipeline_mode = #tpu.pipeline_mode<synchronous>, transform_indices = @transform_5, window_bounds = array<i64: 128, 128>}, {pipeline_mode = #tpu.pipeline_mode<synchronous>, transform_indices = @transform_6, window_bounds = array<i64: 1, 128>}, {transform_indices = @transform_7, window_bounds = array<i64: 8, 128>}]} {
    %c0 = arith.constant 0 : index
    %c0_0 = arith.constant 0 : index
    %0 = vector.load %arg1[%c0, %c0_0] : memref<8x180xf32, #tpu.memory_space<vmem>>, vector<8x180xf32>
    %1 = arith.truncf %0 : vector<8x180xf32> to vector<8x180xbf16>
    %c0_1 = arith.constant 0 : index
    %c0_2 = arith.constant 0 : index
    %2 = vector.load %arg2[%c0_1, %c0_2] : memref<180x256xbf16, #tpu.memory_space<vmem>>, vector<180x256xbf16>
    %cst = arith.constant dense<0.000000e+00> : vector<8x256xf32>
    %3 = tpu.matmul %1, %2, %cst {dimension_numbers = #tpu.dot_dimension_numbers<[1], [0], [0], [1], [0, 0, 1, 1], [], []>} : vector<8x180xbf16>, vector<180x256xbf16>, vector<8x256xf32> -> vector<8x256xf32>
    %c0_3 = arith.constant 0 : index
    %c0_4 = arith.constant 0 : index
    %4 = vector.load %arg3[%c0_3, %c0_4] : memref<1x256xf32, #tpu.memory_space<vmem>>, vector<1x256xf32>
    %5 = vector.broadcast %4 : vector<1x256xf32> to vector<8x256xf32>
    %6 = arith.addf %3, %5 : vector<8x256xf32>
    %cst_5 = arith.constant 0.000000e+00 : f32
    %7 = vector.broadcast %cst_5 : f32 to vector<8x256xf32>
    %8 = arith.maximumf %6, %7 : vector<8x256xf32>
    %9 = arith.truncf %8 : vector<8x256xf32> to vector<8x256xbf16>
    %c0_6 = arith.constant 0 : index
    %c0_7 = arith.constant 0 : index
    %10 = vector.load %arg4[%c0_6, %c0_7] : memref<256x128xbf16, #tpu.memory_space<vmem>>, vector<256x128xbf16>
    %cst_8 = arith.constant dense<0.000000e+00> : vector<8x128xf32>
    %11 = tpu.matmul %9, %10, %cst_8 {dimension_numbers = #tpu.dot_dimension_numbers<[1], [0], [0], [1], [0, 0, 1, 1], [], []>} : vector<8x256xbf16>, vector<256x128xbf16>, vector<8x128xf32> -> vector<8x128xf32>
    %c0_9 = arith.constant 0 : index
    %c0_10 = arith.constant 0 : index
    %12 = vector.load %arg5[%c0_9, %c0_10] : memref<1x128xf32, #tpu.memory_space<vmem>>, vector<1x128xf32>
    %13 = vector.broadcast %12 : vector<1x128xf32> to vector<8x128xf32>
    %14 = arith.addf %11, %13 : vector<8x128xf32>
    %cst_11 = arith.constant 0.000000e+00 : f32
    %15 = vector.broadcast %cst_11 : f32 to vector<8x128xf32>
    %16 = arith.maximumf %14, %15 : vector<8x128xf32>
    %17 = arith.truncf %16 : vector<8x128xf32> to vector<8x128xbf16>
    %c0_12 = arith.constant 0 : index
    %c0_13 = arith.constant 0 : index
    %18 = vector.load %arg6[%c0_12, %c0_13] : memref<128x128xbf16, #tpu.memory_space<vmem>>, vector<128x128xbf16>
    %cst_14 = arith.constant dense<0.000000e+00> : vector<8x128xf32>
    %19 = tpu.matmul %17, %18, %cst_14 {dimension_numbers = #tpu.dot_dimension_numbers<[1], [0], [0], [1], [0, 0, 1, 1], [], []>} : vector<8x128xbf16>, vector<128x128xbf16>, vector<8x128xf32> -> vector<8x128xf32>
    %c0_15 = arith.constant 0 : index
    %c0_16 = arith.constant 0 : index
    %20 = vector.load %arg7[%c0_15, %c0_16] : memref<1x128xf32, #tpu.memory_space<vmem>>, vector<1x128xf32>
    %21 = vector.broadcast %20 : vector<1x128xf32> to vector<8x128xf32>
    %22 = arith.addf %19, %21 : vector<8x128xf32>
    %cst_17 = arith.constant 0.000000e+00 : f32
    %23 = vector.broadcast %cst_17 : f32 to vector<8x128xf32>
    %24 = arith.maximumf %22, %23 : vector<8x128xf32>
    %cst_18 = arith.constant 0.000000e+00 : f32
    %25 = vector.broadcast %cst_18 : f32 to vector<8x128xf32>
    %26 = arith.subf %25, %24 : vector<8x128xf32>
    %27 = math.exp %26 : vector<8x128xf32>
    %cst_19 = arith.constant 1.000000e+00 : f32
    %28 = vector.broadcast %cst_19 : f32 to vector<8x128xf32>
    %29 = arith.addf %28, %27 : vector<8x128xf32>
    %30 = tpu.reciprocal %29 {approx = true} : vector<8x128xf32> -> vector<8x128xf32>
    %c0_20 = arith.constant 0 : index
    %c0_21 = arith.constant 0 : index
    %31 = vector.load %arg8[%c0_20, %c0_21] : memref<8x128xf32, #tpu.memory_space<vmem>>, vector<8x128xf32>
    tpu.vector_store %arg8[%c0_20, %c0_21], %30 {strides = array<i32>} : memref<8x128xf32, #tpu.memory_space<vmem>>, vector<8x128xf32>,
    return
  }
  func.func @transform_0(%arg0: i32) -> (i32, i32) {
    %c0_i32 = arith.constant 0 : i32
    %c0_i32_0 = arith.constant 0 : i32
    return %arg0, %c0_i32 : i32, i32
  }
  func.func @transform_1(%arg0: i32) -> (i32, i32) {
    %c0_i32 = arith.constant 0 : i32
    %c0_i32_0 = arith.constant 0 : i32
    %c0_i32_1 = arith.constant 0 : i32
    return %c0_i32, %c0_i32_0 : i32, i32
  }
  func.func @transform_2(%arg0: i32) -> (i32, i32) {
    %c0_i32 = arith.constant 0 : i32
    %c0_i32_0 = arith.constant 0 : i32
    %c0_i32_1 = arith.constant 0 : i32
    return %c0_i32, %c0_i32_0 : i32, i32
  }
  func.func @transform_3(%arg0: i32) -> (i32, i32) {
    %c0_i32 = arith.constant 0 : i32
    %c0_i32_0 = arith.constant 0 : i32
    %c0_i32_1 = arith.constant 0 : i32
    return %c0_i32, %c0_i32_0 : i32, i32
  }
  func.func @transform_4(%arg0: i32) -> (i32, i32) {
    %c0_i32 = arith.constant 0 : i32
    %c0_i32_0 = arith.constant 0 : i32
    %c0_i32_1 = arith.constant 0 : i32
    return %c0_i32, %c0_i32_0 : i32, i32
  }
  func.func @transform_5(%arg0: i32) -> (i32, i32) {
    %c0_i32 = arith.constant 0 : i32
    %c0_i32_0 = arith.constant 0 : i32
    %c0_i32_1 = arith.constant 0 : i32
    return %c0_i32, %c0_i32_0 : i32, i32
  }
  func.func @transform_6(%arg0: i32) -> (i32, i32) {
    %c0_i32 = arith.constant 0 : i32
    %c0_i32_0 = arith.constant 0 : i32
    %c0_i32_1 = arith.constant 0 : i32
    return %c0_i32, %c0_i32_0 : i32, i32
  }
  func.func @transform_7(%arg0: i32) -> (i32, i32) {
    %c0_i32 = arith.constant 0 : i32
    %c0_i32_0 = arith.constant 0 : i32
    return %arg0, %c0_i32 : i32, i32
  }
}

</mosaic_0001>

<bundles_post_ra>
// kernel: tpu_custom_call.1
= control target key start
LH: loop header
LB: loop body
LE: loop exit
PB: predicated region body
PF: predicated region fallthrough
CT: control target
= control target key end

     0   :  { %12 = vsyncpa [#allocation3], 0  ;;  %s1058_s0 = inlined_call_operand.hbm [shape: f32[8,180], index: 0, kind: input, shape index: {}]   ;;  %s1059_s1 = inlined_call_operand.hbm [shape: bf16[180,256], index: 1, kind: input, shape index: {}]   ;;  %s1060_s2 = inlined_call_operand.hbm [shape: f32[1,256], index: 2, kind: input, shape index: {}]   ;;  %s1061_s3 = inlined_call_operand.hbm [shape: bf16[256,128], index: 3, kind: input, shape index: {}]   ;;  %s1062_s4 = inlined_call_operand.vmem [shape: f32[1,128], index: 4, kind: input, shape index: {}]   ;;  %s1063_s5 = inlined_call_operand.hbm [shape: bf16[128,128], index: 5, kind: input, shape index: {}]   ;;  %s1064_s6 = inlined_call_operand.vmem [shape: f32[1,128], index: 6, kind: input, shape index: {}]   ;;  %s1065_s7 = inlined_call_operand.hbm [shape: f32[8,128], index: 7, kind: output, shape index: {}]  }
   0x1   :  { %13 = vsyncpa [#allocation6], 0 }
   0x2   :  { %14 = vsyncpa [#allocation9], 0  ;;  %s31_s26 = sshll.u32 %s1059_s1, 4  ;;  %s32_s26 = int_to_ptr.hbm [resolvable:$true] %s31_s26 }
   0x3   :  { %15 = vsyncpa [#allocation4], 0  ;;  %s984_s27 = smov [#allocation5]   ;;  %s55_s8 = sshll.u32 %s1061_s3, 4  ;;  %s56_s8 = int_to_ptr.hbm [resolvable:$true] %s55_s8 }
   0x4   :  { %s33_s28 = sshll.u32 %s984_s27, 4  ;;  %s985_s9 = smov 128   ;;  %s34_s28 = int_to_ptr.vmem [resolvable:$true] %s33_s28 }
   0x5   :  { %s986_s10 = smov 8   ;;  %s987_s11 = smov [#allocation8]  }
   0x6   :  { %39 = dma.hbm_to_vmem [thread:$0]  %s32_s26, 2944, %s34_s28, [#allocation6], %s985_s9, %s985_s9, %s986_s10  }
   0x7   :  { %s57_s12 = sshll.u32 %s987_s11, 4  ;;  %s988_s13 = smov 64   ;;  %s58_s12 = int_to_ptr.vmem [resolvable:$true] %s57_s12 }
   0x8   :  { %s989_s14 = smov 4   ;;  %s21_s16 = sshll.u32 %s1058_s0, 4  ;;  %s22_s16 = int_to_ptr.hbm [resolvable:$true] %s21_s16 }
   0x9   :  { %63 = dma.hbm_to_vmem [thread:$0]  %s56_s8, 2048, %s58_s12, [#allocation9], %s988_s13, %s988_s13, %s989_s14  }
   0xa   :  { %s990_s17 = smov [#allocation2]   ;;  %s45_s20 = sshll.u32 %s1060_s2, 4  ;;  %s46_s20 = int_to_ptr.hbm [resolvable:$true] %s45_s20 }
   0xb   :  { %s23_s18 = sshll.u32 %s990_s17, 4  ;;  %s991_s21 = smov [#allocation7]   ;;  %s24_s18 = int_to_ptr.vmem [resolvable:$true] %s23_s18 }
   0xc   :  { %26 = dma.hbm_to_vmem [thread:$0]  %s22_s16, 256, %s24_s18, [#allocation3]  }
   0xd   :  { %s47_s22 = sshll.u32 %s991_s21, 4  ;;  %s70_s25 = sshll.u32 %s1063_s5, 4  ;;  %s48_s22 = int_to_ptr.vmem [resolvable:$true] %s47_s22  ;;  %s71_s25 = int_to_ptr.hbm [resolvable:$true] %s70_s25 }
   0xe   :  { %50 = dma.hbm_to_vmem [thread:$0]  %s46_s20, 32, %s48_s22, [#allocation6]  }
   0xf   :  { %s992_s0 = smov [#allocation10]  }
  0x10   :  { %s72_s26 = sshll.u32 %s992_s0, 4  ;;  %s73_s26 = int_to_ptr.vmem [resolvable:$true] %s72_s26 }
  0x11   :  { %78 = dma.hbm_to_vmem [thread:$0]  %s71_s25, 1024, %s73_s26, [#allocation9], %s988_s13, %s988_s13, %s989_s14  }
  0x12   :  { %976 = dma.done.wait [#allocation3], 256  }
  0x13   :  { %977 = vsyncadd [#allocation3], 4294967040 }
  0x14   :  { %978 = dma.done.wait [#allocation6], 2976  }
  0x15   :  { %979 = vsyncadd [#allocation6], 4294964320 }
  0x16   :  { %980 = dma.done.wait [#allocation9], 3072  }
  0x17   :  { %981 = vsyncadd [#allocation9], 4294964224  ;;  %v784_v0 = vld [vmem:[#allocation5 + $0x74] sm:$0xf]  ;;  %v644_v1 = vld [vmem:[#allocation5 + $0x78] sm:$0xf0] }
  0x18   :  { %v642_v2 = vld [vmem:[#allocation5 + $0x70] sm:$0xf]  ;;  %v647_v3 = vor.u32 %v784_v0, %v644_v1  ;;  %v785_v4 = vld [vmem:[#allocation5 + $0x74] sm:$0xf0]  ;;  %v782_v5 = vld [vmem:[#allocation5 + $0x64] sm:$0xf] }
  0x19   :  { %v636_v6 = vld [vmem:[#allocation5 + $0x68] sm:$0xf0]  ;;  %v643_v7 = vor.u32 %v785_v4, %v642_v2  ;;  %v634_v8 = vld [vmem:[#allocation5 + $0x60] sm:$0xf]  ;;  %v783_v9 = vld [vmem:[#allocation5 + $0x64] sm:$0xf0] }
  0x1a   :  { %287 = vmatpush.bf16.msra.mxu2 %v647_v3  ;;  %v639_v10 = vor.u32 %v782_v5, %v636_v6  ;;  %v635_v11 = vor.u32 %v783_v9, %v634_v8  ;;  %v780_v12 = vld [vmem:[#allocation5 + $0x54] sm:$0xf]  ;;  %v628_v13 = vld [vmem:[#allocation5 + $0x58] sm:$0xf0]  ;;  %v626_v15 = vld [vmem:[#allocation5 + $0x50] sm:$0xf] }
  0x1b   :  { %261 = vmatpush.bf16.msra.mxu0 %v643_v7  ;;  %v128_v14 = vld [vmem:[#allocation5 + $0xb0] sm:$0x33]  ;;  %v781_v16 = vld [vmem:[#allocation5 + $0x54] sm:$0xf0]  ;;  %vm254_vm0 = vcmask 1041408   ;;  %v631_v19 = vor.u32 %v780_v12, %v628_v13  ;;  %vm250_vm1 = vcmask 424960  }
  0x1c   :  { %v203_v17 = vunpack.c.h.b16 %v128_v14  ;;  %v202_v18 = vunpack.c.l.b16 %v128_v14  ;;  %v790_v21 = vld [vmem:[#allocation5 + $0xa4] sm:$0xf]  ;;  %v668_v22 = vld [vmem:[#allocation5 + $0xa8] sm:$0xf0]  ;;  %v627_v24 = vor.u32 %v781_v16, %v626_v15  ;;  %v618_v28 = vld [vmem:[#allocation5 + $0x40] sm:$0xf] }
  0x1d   :  { %v778_v25 = vld [vmem:[#allocation5 + $0x44] sm:$0xf]  ;;  %v620_v26 = vld [vmem:[#allocation5 + $0x48] sm:$0xf0]  ;;  %v779_v29 = vld [vmem:[#allocation5 + $0x44] sm:$0xf0]  ;;  %v671_v31 = vor.u32 %v790_v21, %v668_v22 }
  0x1e   :  { %288 = vmatpush.bf16.msra.mxu2 %v639_v10  ;;  %v227_v20 = vpack.c.b16 %v203_v17, %v203_v17  ;;  %v226_v23 = vpack.c.b16 %v202_v18, %v202_v18  ;;  %v666_v32 = vld [vmem:[#allocation5 + $0xa0] sm:$0xf]  ;;  %v623_v33 = vor.u32 %v778_v25, %v620_v26  ;;  %v788_v34 = vld [vmem:[#allocation5 + $0x94] sm:$0xf]  ;;  %v660_v35 = vld [vmem:[#allocation5 + $0x98] sm:$0xf0]  ;;  %v619_v37 = vor.u32 %v779_v29, %v618_v28 }
  0x1f   :  { %262 = vmatpush.bf16.msra.mxu0 %v635_v11  ;;  %v791_v36 = vld [vmem:[#allocation5 + $0xa4] sm:$0xf0]  ;;  %v776_v38 = vld [vmem:[#allocation5 + $0x34] sm:$0xf]  ;;  %v612_v39 = vld [vmem:[#allocation5 + $0x38] sm:$0xf0]  ;;  %v663_v45 = vor.u32 %v788_v34, %v660_v35 }
  0x20   :  { %v259_v27 = vsel %vm254_vm0, %v227_v20, 0  ;;  %v256_v30 = vsel %vm254_vm0, %v226_v23, 0  ;;  %v610_v40 = vld [vmem:[#allocation5 + $0x30] sm:$0xf]  ;;  %v667_v41 = vor.u32 %v791_v36, %v666_v32  ;;  %v777_v42 = vld [vmem:[#allocation5 + $0x34] sm:$0xf0]  ;;  %v615_v48 = vor.u32 %v776_v38, %v612_v39 }
  0x21   :  { %304 = vmatpush.bf16.msra.mxu3 %v259_v27  ;;  %278 = vmatpush.bf16.msra.mxu1 %v256_v30  ;;  %v658_v43 = vld [vmem:[#allocation5 + $0x90] sm:$0xf]  ;;  %v789_v44 = vld [vmem:[#allocation5 + $0x94] sm:$0xf0]  ;;  %v786_v46 = vld [vmem:[#allocation5 + $0x84] sm:$0xf]  ;;  %v611_v52 = vor.u32 %v777_v42, %v610_v40 }
  0x22   :  { %289 = vmatpush.bf16.msra.mxu2 %v631_v19  ;;  %v659_v47 = vor.u32 %v789_v44, %v658_v43  ;;  %v652_v49 = vld [vmem:[#allocation5 + $0x88] sm:$0xf0]  ;;  %v650_v50 = vld [vmem:[#allocation5 + $0x80] sm:$0xf]  ;;  %v787_v51 = vld [vmem:[#allocation5 + $0x84] sm:$0xf0] }
  0x23   :  { %263 = vmatpush.bf16.msra.mxu0 %v627_v24  ;;  %v774_v53 = vld [vmem:[#allocation5 + $0x24] sm:$0xf]  ;;  %v604_v54 = vld [vmem:[#allocation5 + $0x28] sm:$0xf0]  ;;  %v602_v55 = vld [vmem:[#allocation5 + $0x20] sm:$0xf]  ;;  %v655_v57 = vor.u32 %v786_v46, %v652_v49  ;;  %v651_v59 = vor.u32 %v787_v51, %v650_v50 }
  0x24   :  { %v775_v56 = vld [vmem:[#allocation5 + $0x24] sm:$0xf0]  ;;  %v103_v58 = vld [vmem:[#allocation2 + $0x8] sm:$0xff]  ;;  %v607_v60 = vor.u32 %v774_v53, %v604_v54  ;;  %v772_v63 = vld [vmem:[#allocation5 + $0x14] sm:$0xf]  ;;  %s572_s9 = sshll.u32 %s1065_s7, 4  ;;  %s573_s9 = int_to_ptr.hbm [resolvable:$true] %s572_s9 }
  0x25   :  { %305 = vmatpush.bf16.msra.mxu3 %v671_v31  ;;  %279 = vmatpush.bf16.msra.mxu1 %v667_v41  ;;  %v799_v61 = vld [vmem:[#allocation8 + $0x38] sm:$0xff]  ;;  %v603_v62 = vor.u32 %v775_v56, %v602_v55  ;;  %v596_v0 = vld [vmem:[#allocation5 + $0x18] sm:$0xf0]  ;;  %v105_v2 = vpack.c.bf16 %v103_v58, %v103_v58  ;;  %v798_v6 = vld [vmem:[#allocation8 + $0x30] sm:$0xff] }
  0x26   :  { %290 = vmatpush.bf16.msra.mxu2 %v623_v33  ;;  %v807_v1 = vld [vmem:[#allocation8 + $0x78] sm:$0xff]  ;;  %v599_v5 = vor.u32 %v772_v63, %v596_v0  ;;  %v770_v8 = vld [vmem:[#allocation5 + $0x4] sm:$0xf]  ;;  %v588_v9 = vld [vmem:[#allocation5 + $0x8] sm:$0xf0] }
  0x27   :  { %264 = vmatpush.bf16.msra.mxu0 %v619_v37  ;;  %v594_v3 = vld [vmem:[#allocation5 + $0x10] sm:$0xf]  ;;  %v773_v4 = vld [vmem:[#allocation5 + $0x14] sm:$0xf0]  ;;  %v586_v11 = vld [vmem:[#allocation5] sm:$0xf]  ;;  %v591_v13 = vor.u32 %v770_v8, %v588_v9 }
  0x28   :  { %v595_v7 = vor.u32 %v773_v4, %v594_v3  ;;  %v806_v10 = vld [vmem:[#allocation8 + $0x70] sm:$0xff]  ;;  %v797_v15 = vld [vmem:[#allocation8 + $0x28] sm:$0xff]  ;;  %v796_v19 = vld [vmem:[#allocation8 + $0x20] sm:$0xff] }
  0x29   :  { %306 = vmatpush.bf16.msra.mxu3 %v663_v45  ;;  %280 = vmatpush.bf16.msra.mxu1 %v659_v47  ;;  %v771_v12 = vld [vmem:[#allocation5 + $0x4] sm:$0xf0]  ;;  %v102_v14 = vld [vmem:[#allocation2] sm:$0xff]  ;;  %v804_v20 = vld [vmem:[#allocation8 + $0x60] sm:$0xff] }
  0x2a   :  { %291 = vmatpush.bf16.msra.mxu2 %v615_v48  ;;  %v587_v16 = vor.u32 %v771_v12, %v586_v11  ;;  %v805_v17 = vld [vmem:[#allocation8 + $0x68] sm:$0xff]  ;;  %v104_v18 = vpack.c.bf16 %v102_v14, %v102_v14  ;;  %v795_v21 = vld [vmem:[#allocation8 + $0x18] sm:$0xff]  ;;  %v794_v22 = vld [vmem:[#allocation8 + $0x10] sm:$0xff] }
  0x2b   :  { %265 = vmatpush.bf16.msra.mxu0 %v611_v52  ;;  %v803_v23 = vld [vmem:[#allocation8 + $0x58] sm:$0xff]  ;;  %v793_v24 = vld [vmem:[#allocation8 + $0x8] sm:$0xff]  ;;  %v802_v25 = vld [vmem:[#allocation8 + $0x50] sm:$0xff] }
  0x2c   :  { %v792_v26 = vld [vmem:[#allocation8] sm:$0xff]  ;;  %v801_v27 = vld [vmem:[#allocation8 + $0x48] sm:$0xff]  ;;  %v815_v29 = vld [vmem:[#allocation10 + $0x38] sm:$0xff] }
  0x2d   :  { %307 = vmatpush.bf16.msra.mxu3 %v655_v57  ;;  %281 = vmatpush.bf16.msra.mxu1 %v651_v59  ;;  %v800_v28 = vld [vmem:[#allocation8 + $0x40] sm:$0xff]  ;;  %v814_v30 = vld [vmem:[#allocation10 + $0x30] sm:$0xff]  ;;  %v813_v31 = vld [vmem:[#allocation10 + $0x28] sm:$0xff] }
  0x2e   :  { %292 = vmatpush.bf16.msra.mxu2 %v607_v60  ;;  %v812_v33 = vld [vmem:[#allocation10 + $0x20] sm:$0xff]  ;;  %v129_v34 = vld [vmem:[#allocation7] sm:$0x3]  ;;  %v810_v53 = vld [vmem:[#allocation10 + $0x10] sm:$0xff] }
  0x2f   :  { %266 = vmatpush.bf16.msra.mxu0 %v603_v62  ;;  %v131_v36 = vperm.slane %v129_v34, 0  ;;  %v132_v40 = vperm.slane %v129_v34, 1  ;;  %v811_v52 = vld [vmem:[#allocation10 + $0x18] sm:$0xff]  ;;  %v809_v54 = vld [vmem:[#allocation10 + $0x8] sm:$0xff]  ;;  %v808_v55 = vld [vmem:[#allocation10] sm:$0xff] }
  0x30   :  { %673 = vmatmul.msk.bf16.vlgmr.msra.gmra.mxu3 %vm250_vm1, %v105_v2  ;;  %672 = vmatmul.msk.bf16.vlgmr.msra.gmra.mxu1 %vm250_vm1, %v105_v2  ;;  %v826_v57 = vld [vmem:[%s1062_s4] ss:$0 sm:$0xff]  ;;  %s993_s4 = smov [#allocation11]  }
  0x31   :  { %449 = vmatpush.bf16.msrb.mxu1 %v799_v61  ;;  %462 = vmatpush.bf16.msrb.mxu3 %v807_v1  ;;  %v827_v1 = vld [vmem:[%s1064_s6] ss:$0 sm:$0xff]  ;;  %s570_s29 = sshll.u32 %s993_s4, 4  ;;  %s571_s29 = int_to_ptr.vmem [resolvable:$true] %s570_s29 }
  0x32   :  { %293 = vmatpush.bf16.msra.mxu2 %v599_v5 }
  0x33   :  { %267 = vmatpush.bf16.msra.mxu0 %v595_v7 }
  0x35   :  { %450 = vmatpush.bf16.msrb.mxu1 %v798_v6  ;;  %463 = vmatpush.bf16.msrb.mxu3 %v806_v10 }
  0x36   :  { %294 = vmatpush.bf16.msra.mxu2 %v591_v13 }
  0x37   :  { %268 = vmatpush.bf16.msra.mxu0 %v587_v16 }
  0x39   :  { %451 = vmatpush.bf16.msrb.mxu1 %v797_v15  ;;  %464 = vmatpush.bf16.msrb.mxu3 %v805_v17 }
  0x3a   :  { %295 = vmatmul.bf16.vlgmr.msra.gmra.mxu2 %v104_v18  ;;  %269 = vmatmul.bf16.vlgmr.msra.gmra.mxu0 %v104_v18 }
  0x3b   :  { %545 = vmatpush.bf16.msrb.mxu0 %v815_v29 }
  0x3d   :  { %452 = vmatpush.bf16.msrb.mxu1 %v796_v19  ;;  %465 = vmatpush.bf16.msrb.mxu3 %v804_v20 }
  0x3f   :  { %546 = vmatpush.bf16.msrb.mxu0 %v814_v30 }
  0x41   :  { %453 = vmatpush.bf16.msrb.mxu1 %v795_v21  ;;  %466 = vmatpush.bf16.msrb.mxu3 %v803_v23 }
  0x43   :  { %547 = vmatpush.bf16.msrb.mxu0 %v813_v31 }
  0x45   :  { %454 = vmatpush.bf16.msrb.mxu1 %v794_v22  ;;  %467 = vmatpush.bf16.msrb.mxu3 %v802_v25 }
  0x47   :  { %548 = vmatpush.bf16.msrb.mxu0 %v812_v33 }
  0x49   :  { %455 = vmatpush.bf16.msrb.mxu1 %v793_v24  ;;  %468 = vmatpush.bf16.msrb.mxu3 %v801_v27 }
  0x4b   :  { %549 = vmatpush.bf16.msrb.mxu0 %v811_v52 }
  0x4d   :  { %456 = vmatpush.bf16.msrb.mxu1 %v792_v26  ;;  %469 = vmatpush.bf16.msrb.mxu3 %v800_v28 }
  0x4f   :  { %550 = vmatpush.bf16.msrb.mxu0 %v810_v53 }
  0x53   :  { %551 = vmatpush.bf16.msrb.mxu0 %v809_v54 }
  0x57   :  { %552 = vmatpush.bf16.msrb.mxu0 %v808_v55 }
  0xad   :  { %v283_v32 = vpop.f32.mrf.mxu1 }
  0xb3   :  { %v309_v35 = vpop.f32.mrf.mxu3 }
  0xb5   :  { %v285_v37 = vpop.f32.mrf.mxu1 }
  0xb7   :  { %v270_v38 = vpop.f32.mrf.mxu0 }
  0xb8   :  { %v271_v39 = vadd.f32 %v270_v38, %v131_v36 }
  0xba   :  { %v284_v41 = vadd.f32 %v283_v32, %v271_v39 }
  0xbb   :  { %v311_v42 = vpop.f32.mrf.mxu3 }
  0xbc   :  { %v313_v43 = vmax.f32 %v284_v41, 0.0 }
  0xbd   :  { %v296_v44 = vpop.f32.mrf.mxu2 }
  0xbe   :  { %v297_v45 = vadd.f32 %v296_v44, %v132_v40  ;;  %v315_v46 = vpack.c.bf16 %v313_v43, %v313_v43 }
  0xbf   :  { %v272_v48 = vpop.f32.mrf.mxu0 }
  0xc0   :  { %v310_v47 = vadd.f32 %v309_v35, %v297_v45  ;;  %457 = vmatmul.bf16.vlgmr.msrb.gmra.mxu1 %v315_v46 }
  0xc2   :  { %v314_v49 = vmax.f32 %v310_v47, 0.0 }
  0xc4   :  { %v316_v50 = vpack.c.bf16 %v314_v49, %v314_v49 }
  0xc5   :  { %v298_v51 = vpop.f32.mrf.mxu2 }
  0xc6   :  { %470 = vmatmul.bf16.vlgmr.msrb.gmra.mxu3 %v316_v50 }
 0x13d   :  { %v458_v56 = vpop.f32.mrf.mxu1 }
 0x13e   :  { %v459_v58 = vadd.f32 %v826_v57, %v458_v56 }
 0x145   :  { %v460_v59 = vpop.f32.mrf.mxu1 }
 0x149   :  { %v471_v60 = vpop.f32.mrf.mxu3 }
 0x14a   :  { %v472_v61 = vadd.f32 %v471_v60, %v459_v58 }
 0x14c   :  { %v475_v62 = vmax.f32 %v472_v61, 0.0 }
 0x14e   :  { %v476_v63 = vpack.c.bf16 %v475_v62, %v475_v62 }
 0x150   :  { %553 = vmatmul.bf16.vlgmr.msrb.gmra.mxu0 %v476_v63 }
 0x151   :  { %v473_v0 = vpop.f32.mrf.mxu3 }
 0x1cd   :  { %v554_v2 = vpop.f32.mrf.mxu0 }
 0x1ce   :  { %v555_v3 = vadd.f32 %v827_v1, %v554_v2 }
 0x1d0   :  { %v558_v4 = vmax.f32 %v555_v3, 0.0 }
 0x1d2   :  { %v559_v5 = vsub.f32 0.0, %v558_v4 }
 0x1d4   :  { %v560_v6 = vmul.f32 1.442695, %v559_v5 }
 0x1d5   :  { %v556_v7 = vpop.f32.mrf.mxu0 }
 0x1d6   :  { %828 = vpow2.f32 %v560_v6 }
 0x1dc   :  { %v829_v8 = vpop.eup %828 }
 0x1dd   :  { %v562_v9 = vadd.f32 1.0, %v829_v8 }
 0x1df   :  { %830 = vrcp.f32 %v562_v9 }
 0x1e5   :  { %v831_v10 = vpop.eup %830 }
 0x1e6   :  { %564 = vst [vmem:[#allocation11] sm:$0xff] %v831_v10 }
 0x1e7   :  { %575 = dma.vmem_to_hbm [thread:$0]  %s571_s29, 128, %s573_s9, [#allocation4]  }
 0x1e8   :  { %982 = dma.done.wait [#allocation4], 128  }
 0x1e9   :  { %983 = vsyncadd [#allocation4], 4294967168 }
 0x1ea   :  { %580 = vsyncpa [#allocation3], 1 }
 0x1eb   :  { %581 = vsyncpa [#allocation6], 1 }
 0x1ec   :  { %582 = vsyncpa [#allocation9], 1 }
 0x1ed   :  { %583 = vsyncpa [#allocation4], 1 }

</bundles_post_ra>
